<compile_context>
chip_gen: v6e
topology: v6e:2x2x1
jax: 0.10.0
libtpu: 0.0.40
codegen_flags: <defaults>
</compile_context>

<pallas_src>
import jax
import jax.numpy as jnp
from jax.experimental import pallas as pl
from jax.experimental.pallas import tpu as pltpu

_LANE = 128
# ~2 MiB per tile buffer: in + out, double-buffered => ~8 MiB VMEM working set.
_TARGET_TILE_BYTES = 2 * 1024 * 1024
# Below this, a fused jnp expression beats the pallas_call launch overhead.
_MIN_PALLAS_BYTES = 256 * 1024


def _round_up(a: int, b: int) -> int:
    return -(-a // b) * b


def _sublane_multiple(dtype) -> int:
    # 32-bit dtypes tile (8,128), 16-bit (16,128), 8-bit (32,128).
    itemsize = jnp.dtype(dtype).itemsize
    return max(8, 32 // max(itemsize, 1))


def _h_sigmoid_expr(x):
    y = jnp.minimum(jnp.maximum(x.astype(jnp.float32) + 3.0, 0.0), 6.0) * (1.0 / 6.0)
    return y.astype(x.dtype)


def _h_sigmoid_kernel(x_ref, o_ref):
    # x_ref / o_ref: (tile_rows, lane) lane-dense VMEM tiles.
    x = x_ref[...].astype(jnp.float32)
    y = jnp.minimum(jnp.maximum(x + 3.0, 0.0), 6.0) * (1.0 / 6.0)
    o_ref[...] = y.astype(o_ref.dtype)


def h_sigmoid(x, *, force_pallas: bool = False):
    """Elementwise ReLU6(x + 3) / 6, any shape, via a lane-dense Pallas kernel."""
    # Match torch true-division semantics for integer inputs: compute in float.
    if not jnp.issubdtype(x.dtype, jnp.floating):
        x = x.astype(jnp.float32)

    orig_shape = x.shape
    dtype = x.dtype
    itemsize = jnp.dtype(dtype).itemsize
    total = int(x.size)

    if total == 0:
        return x

    # Small-tensor fast path: let XLA fuse the elementwise expression.
    if not force_pallas and total * itemsize < _MIN_PALLAS_BYTES:
        return _h_sigmoid_expr(x)

    # Widest lane extent (multiple of 128) that divides the element count ->
    # the (rows, lane) view is a free reshape of the contiguous buffer and
    # every vld/vst is wide and unmasked.
    lane = 0
    for cand in (1024, 512, 256, 128):
        if total % cand == 0:
            lane = cand
            break
    pad = 0
    if lane == 0:
        lane = _LANE
        pad = _round_up(total, lane) - total  # <= 127 padded elements

    x_flat = x.reshape(-1)
    if pad:
        x_flat = jnp.pad(x_flat, (0, pad))
    rows = (total + pad) // lane
    x2d = x_flat.reshape(rows, lane)

    sub = _sublane_multiple(dtype)
    # Rows per tile targeting ~_TARGET_TILE_BYTES per buffer, sublane-aligned.
    tile_rows = max(sub, (_TARGET_TILE_BYTES // (lane * itemsize)) // sub * sub)
    if rows <= tile_rows:
        if rows >= 2 * sub and total * itemsize >= _MIN_PALLAS_BYTES:
            # Split into >=2 blocks so v7x's two TensorCores both get work.
            tile_rows = _round_up(pl.cdiv(rows, 2), sub)
        else:
            # Single full-extent block (always a legal block shape).
            tile_rows = rows

    grid = (pl.cdiv(rows, tile_rows),)  # last block may be partial (masked store)

    out2d = pl.pallas_call(
        _h_sigmoid_kernel,
        out_shape=jax.ShapeDtypeStruct((rows, lane), dtype),
        grid_spec=pltpu.PrefetchScalarGridSpec(
            num_scalar_prefetch=0,
            grid=grid,
            in_specs=[pl.BlockSpec((tile_rows, lane), lambda i: (i, 0))],
            out_specs=pl.BlockSpec((tile_rows, lane), lambda i: (i, 0)),
        ),
        compiler_params=pltpu.CompilerParams(
            dimension_semantics=("parallel",)),
        cost_estimate=pl.CostEstimate(
            flops=3 * total,
            transcendentals=0,
            bytes_accessed=2 * total * itemsize),
    )(x2d)

    out = out2d.reshape(-1)
    if pad:
        out = out[:total]
    return out.reshape(orig_shape)


def _reference(x):
    # Pure-JAX reference of ReLU6(x + 3) / 6, computed in f32.
    y = jnp.clip(x.astype(jnp.float32) + 3.0, 0.0, 6.0) / 6.0
    return y.astype(x.dtype)


if __name__ == "__main__":
    key = jax.random.PRNGKey(0)
    k0, k1, k2, k3 = jax.random.split(key, 4)

    run_forced = jax.jit(lambda v: h_sigmoid(v, force_pallas=True))
    run_auto = jax.jit(h_sigmoid)

    # 1) Module-sized small input (2,4,16,16): forced through the kernel,
    #    single (2,1024) lane-dense block, no padding.
    x_small = 4.0 * jax.random.normal(k0, (2, 4, 16, 16), jnp.float32)
    out_small = jax.block_until_ready(run_forced(x_small))
    assert out_small.shape == x_small.shape and out_small.dtype == x_small.dtype
    assert jnp.allclose(out_small, _reference(x_small), rtol=1e-6, atol=1e-6)

    # 2) Larger activation (8,64,32,32): natural multi-step grid (>=2 blocks),
    #    no pad/slice copies, wide 1024-lane slab.
    x_big = 4.0 * jax.random.normal(k1, (8, 64, 32, 32), jnp.float32)
    out_big = jax.block_until_ready(run_auto(x_big))
    assert jnp.allclose(out_big, _reference(x_big), rtol=1e-6, atol=1e-6)

    # 3) Awkward element count (3,5,7,9): exercises the small tail-pad fallback.
    x_odd = 4.0 * jax.random.normal(k2, (3, 5, 7, 9), jnp.float32)
    out_odd = jax.block_until_ready(run_forced(x_odd))
    assert jnp.allclose(out_odd, _reference(x_odd), rtol=1e-6, atol=1e-6)

    # 4) bf16 input: dtype-aware sublane rounding, f32 compute, bf16 store.
    x_bf16 = (4.0 * jax.random.normal(k3, (4, 8, 32, 32), jnp.float32)).astype(jnp.bfloat16)
    out_bf16 = jax.block_until_ready(run_forced(x_bf16))
    assert out_bf16.dtype == jnp.bfloat16
    assert jnp.allclose(out_bf16.astype(jnp.float32),
                        _reference(x_bf16).astype(jnp.float32),
                        rtol=1e-2, atol=1e-2)

    print("KERNEL_OK")
</pallas_src>

<mosaic_0001>
module attributes {stable_mosaic.version = 11 : i64} {
  func.func @_h_sigmoid_kernel(%arg0: i32, %arg1: memref<2x1024xf32, #tpu.memory_space<vmem>>, %arg2: memref<2x1024xf32, #tpu.memory_space<vmem>>) attributes {dimension_semantics = [#tpu.dimension_semantics<parallel>], iteration_bounds = array<i64: 1>, scalar_prefetch = 0 : i64, scratch_operands = 0 : i64, tpu.core_type = #tpu.core_type<tc>, window_params = [{transform_indices = @transform_0, window_bounds = array<i64: 2, 1024>}, {transform_indices = @transform_1, window_bounds = array<i64: 2, 1024>}]} {
    %c0 = arith.constant 0 : index
    %c0_0 = arith.constant 0 : index
    %0 = vector.load %arg1[%c0, %c0_0] : memref<2x1024xf32, #tpu.memory_space<vmem>>, vector<2x1024xf32>
    %cst = arith.constant 3.000000e+00 : f32
    %1 = vector.broadcast %cst : f32 to vector<2x1024xf32>
    %2 = arith.addf %0, %1 : vector<2x1024xf32>
    %cst_1 = arith.constant 0.000000e+00 : f32
    %3 = vector.broadcast %cst_1 : f32 to vector<2x1024xf32>
    %4 = arith.maximumf %2, %3 : vector<2x1024xf32>
    %cst_2 = arith.constant 6.000000e+00 : f32
    %5 = vector.broadcast %cst_2 : f32 to vector<2x1024xf32>
    %6 = arith.minimumf %4, %5 : vector<2x1024xf32>
    %cst_3 = arith.constant 0.166666672 : f32
    %7 = vector.broadcast %cst_3 : f32 to vector<2x1024xf32>
    %8 = arith.mulf %6, %7 : vector<2x1024xf32>
    %c0_4 = arith.constant 0 : index
    %c0_5 = arith.constant 0 : index
    %9 = vector.load %arg2[%c0_4, %c0_5] : memref<2x1024xf32, #tpu.memory_space<vmem>>, vector<2x1024xf32>
    tpu.vector_store %arg2[%c0_4, %c0_5], %8 {strides = array<i32>} : memref<2x1024xf32, #tpu.memory_space<vmem>>, vector<2x1024xf32>,
    return
  }
  func.func @transform_0(%arg0: i32) -> (i32, i32) {
    %c0_i32 = arith.constant 0 : i32
    %c0_i32_0 = arith.constant 0 : i32
    return %arg0, %c0_i32 : i32, i32
  }
  func.func @transform_1(%arg0: i32) -> (i32, i32) {
    %c0_i32 = arith.constant 0 : i32
    %c0_i32_0 = arith.constant 0 : i32
    return %arg0, %c0_i32 : i32, i32
  }
}

</mosaic_0001>

<bundles_post_ra>
// kernel: _lambda_.1
= control target key start
LH: loop header
LB: loop body
LE: loop exit
PB: predicated region body
PF: predicated region fallthrough
CT: control target
= control target key end

     0   :  { %s46_s0 = inlined_call_operand.vmem [shape: f32[2,1024], index: 0, kind: input, shape index: {}]   ;;  %s47_s1 = inlined_call_operand.vmem [shape: f32[2,1024], index: 1, kind: output, shape index: {}]  }
   0x1   :  { %v8_v0 = vld [vmem:[%s46_s0] sm:$0xff]  ;;  %v9_v1 = vld [vmem:[%s46_s0 + $0x8] sm:$0xff] }
   0x2   :  { %v10_v2 = vadd.f32 3.0, %v8_v0  ;;  %v11_v3 = vadd.f32 3.0, %v9_v1 }
   0x4   :  { %v12_v4 = vmax.f32 %v10_v2, 0.0  ;;  %v13_v5 = vmax.f32 %v11_v3, 0.0 }
   0x6   :  { %v14_v6 = vmin.f32 %v12_v4, 6.0  ;;  %v15_v7 = vmin.f32 %v13_v5, 6.0 }
   0x8   :  { %v16_v8 = vmul.f32 0.16666667, %v14_v6  ;;  %v17_v9 = vmul.f32 0.16666667, %v15_v7 }
   0xa   :  { %18 = vst [vmem:[%s47_s1] sm:$0xff] %v16_v8  ;;  %19 = vst [vmem:[%s47_s1 + $0x8] sm:$0xff] %v17_v9 }

</bundles_post_ra>
